<compile_context>
chip_gen: v7x
topology: tpu7x:2x2x1
jax: 0.10.0
libtpu: 0.0.40
codegen_flags: <defaults>
</compile_context>

<pallas_src>
import jax
import jax.numpy as jnp
import numpy as np
from jax.experimental import pallas as pl
from jax.experimental.pallas import tpu as pltpu


# --------------------------------------------------------------------------
# Pallas kernel: all sub-band convs as one lane-dense matmul + bias + ReLU.
# --------------------------------------------------------------------------
def _fused_subband_kernel(x_ref, w_ref, b_ref, o_ref):
    y = jnp.dot(x_ref[...], w_ref[...], preferred_element_type=jnp.float32)
    o_ref[...] = jnp.maximum(y + b_ref[...], 0.0).astype(o_ref.dtype)


# --------------------------------------------------------------------------
# Weight-side preprocessing (tiny; O(F^2), independent of batch*frames).
# --------------------------------------------------------------------------
def _toeplitz_weight(weight, f_in, stride):
    """Lower one Conv1d(C_out, C_in, K, stride, padding=0) to a dense matrix.

    Returns W of shape (C_in*F, C_out, F_out) with row index ci*F + f so that
        y[n, co, fo] = sum_{ci, f} x[n, ci, f] * W[ci*F + f, co, fo]
    reproduces the valid strided convolution.
    """
    c_out, c_in, k = weight.shape
    f_out = (f_in - k) // stride + 1
    f = jnp.arange(f_in)[:, None]                    # (F, 1)
    fo = jnp.arange(f_out)[None, :]                  # (1, F_out)
    tap = f - fo * stride                            # (F, F_out) tap index k
    valid = (tap >= 0) & (tap < k)
    tap_c = jnp.clip(tap, 0, k - 1)
    w_t = jnp.transpose(weight, (1, 2, 0))           # (C_in, K, C_out)
    g = w_t[:, tap_c, :]                             # (C_in, F, F_out, C_out)
    g = jnp.where(valid[None, :, :, None], g, 0.0)
    g = jnp.transpose(g, (0, 1, 3, 2))               # (C_in, F, C_out, F_out)
    return g.reshape(c_in * f_in, c_out, f_out), f_out


def _pick_tile_n(n, d_in, d_out, itemsize=4, budget_bytes=24 << 20):
    """Largest N-tile that divides N and keeps double-buffered VMEM in budget
    (budget chosen to fit v7x's 64 MiB / v5e's smaller scoped default)."""
    w_bytes = (d_in + 1) * d_out * itemsize          # weights + bias (resident)
    for t in (1024, 512, 256, 128, 64, 32, 16, 8):
        if n % t == 0:
            need = 2 * t * (d_in + d_out) * itemsize + w_bytes
            if need <= budget_bytes:
                return t, need
    # Fallback: one whole-N block (always a legal full-dim block).
    return n, 2 * n * (d_in + d_out) * itemsize + w_bytes


# --------------------------------------------------------------------------
# Module forward (mirrors SubBandEncoder.forward).
# --------------------------------------------------------------------------
def sub_band_encoder(amplitude_spectrum, params):
    """amplitude_spectrum: (N, C_in, F) with N = batch * frames.

    Returns (sub_band_encodes, local_feature) exactly like the PyTorch module:
    local_feature is (N, C_out, sum_b F_out_b); sub_band_encodes are its
    per-band slices along the frequency axis.
    """
    n, c_in, f_in = amplitude_spectrum.shape
    c_out = params[0]["weight"].shape[0]
    assert all(p["weight"].shape[0] == c_out for p in params), (
        "torch.cat(dim=2) requires identical out_channels across bands")

    # ---- build the fused (already-concatenated) Toeplitz weight & bias -----
    w_parts, b_parts, spans = [], [], []
    off = 0
    for p in params:
        g, f_out = _toeplitz_weight(p["weight"].astype(jnp.float32),
                                    f_in, p["stride"])
        w_parts.append(g)
        b_parts.append(jnp.broadcast_to(
            p["bias"].astype(jnp.float32)[:, None], (c_out, f_out)))
        spans.append((off, f_out))
        off += f_out
    f_total = off
    d_in = c_in * f_in
    d_out = c_out * f_total
    w_full = jnp.concatenate(w_parts, axis=2).reshape(d_in, d_out)
    b_full = jnp.concatenate(b_parts, axis=1).reshape(1, d_out)

    # ---- activation path: free reshape -> fused kernel -> free reshape -----
    x_flat = amplitude_spectrum.reshape(n, d_in)     # (N, C_in*F) lane-dense

    tile_n, need_bytes = _pick_tile_n(n, d_in, d_out)
    grid = (n // tile_n,)
    vmem_limit = int(max(need_bytes + (2 << 20), 8 << 20))

    y_flat = pl.pallas_call(
        _fused_subband_kernel,
        grid=grid,
        in_specs=[
            pl.BlockSpec((tile_n, d_in), lambda i: (i, 0)),   # activation tile
            pl.BlockSpec((d_in, d_out), lambda i: (0, 0)),    # fused weights
            pl.BlockSpec((1, d_out), lambda i: (0, 0)),       # fused bias
        ],
        out_specs=pl.BlockSpec((tile_n, d_out), lambda i: (i, 0)),
        out_shape=jax.ShapeDtypeStruct((n, d_out), jnp.float32),
        compiler_params=pltpu.CompilerParams(
            dimension_semantics=("parallel",),
            vmem_limit_bytes=vmem_limit),
    )(x_flat, w_full, b_full)

    local_feature = y_flat.reshape(n, c_out, f_total)  # already concatenated
    sub_band_encodes = [local_feature[:, :, o:o + fo] for o, fo in spans]
    return sub_band_encodes, local_feature


# --------------------------------------------------------------------------
# Parameter init (deterministic, PyTorch Conv1d-style uniform).
# --------------------------------------------------------------------------
def init_sub_band_encoder_params(configs, key):
    params = []
    for _, enc_cfg in configs["sub_band_encoder"].items():
        conv = enc_cfg["conv"]
        key, wk, bk = jax.random.split(key, 3)
        fan_in = conv["in_channels"] * conv["kernel_size"]
        bound = 1.0 / np.sqrt(fan_in)
        w = jax.random.uniform(
            wk, (conv["out_channels"], conv["in_channels"],
                 conv["kernel_size"]), jnp.float32, -bound, bound)
        b = jax.random.uniform(bk, (conv["out_channels"],), jnp.float32,
                               -bound, bound)
        params.append({"weight": w, "bias": b,
                       "kernel_size": conv["kernel_size"],
                       "stride": conv["stride"]})
    return params


def _reference_block(x, w, b, stride):
    """Plain-JAX reference: Conv1d (valid) + bias + ReLU in NCF layout."""
    y = jax.lax.conv_general_dilated(
        x, w, window_strides=(stride,), padding="VALID",
        dimension_numbers=("NCH", "OIH", "NCH"))
    return jnp.maximum(y + b[None, :, None], 0.0)


if __name__ == "__main__":
    CONFIGS = {
        "sub_band_encoder": {
            "encoder_1": {"conv": dict(in_channels=4, out_channels=16,
                                       kernel_size=2, stride=1)},
            "encoder_2": {"conv": dict(in_channels=4, out_channels=16,
                                       kernel_size=4, stride=2)},
            "encoder_3": {"conv": dict(in_channels=4, out_channels=16,
                                       kernel_size=8, stride=4)},
        }
    }

    key = jax.random.PRNGKey(0)
    key, xk, pk = jax.random.split(key, 3)
    batch, frames, channels, freq = 2, 8, 4, 32
    # amplitude_spectrum: (batch * frames, channels, frequency)
    x = jax.random.normal(xk, (batch * frames, channels, freq), jnp.float32)
    params = init_sub_band_encoder_params(CONFIGS, pk)

    sub_band_encodes, local_feature = sub_band_encoder(x, params)
    jax.block_until_ready(local_feature)

    # Correctness check against a plain-JAX per-band conv reference + concat.
    ref_encodes = [_reference_block(x, p["weight"], p["bias"], p["stride"])
                   for p in params]
    ref_local = jnp.concatenate(ref_encodes, axis=2)
    for got, ref in zip(sub_band_encodes, ref_encodes):
        np.testing.assert_allclose(np.asarray(got), np.asarray(ref),
                                   rtol=1e-4, atol=1e-4)
    np.testing.assert_allclose(np.asarray(local_feature),
                               np.asarray(ref_local), rtol=1e-4, atol=1e-4)

    print("KERNEL_OK")
</pallas_src>

<mosaic_0001>
module attributes {stable_mosaic.version = 11 : i64} {
  func.func @_fused_subband_kernel(%arg0: i32, %arg1: memref<16x128xf32, #tpu.memory_space<vmem>>, %arg2: memref<128x848xf32, #tpu.memory_space<vmem>>, %arg3: memref<1x848xf32, #tpu.memory_space<vmem>>, %arg4: memref<16x848xf32, #tpu.memory_space<vmem>>) attributes {dimension_semantics = [#tpu.dimension_semantics<parallel>], iteration_bounds = array<i64: 1>, scalar_prefetch = 0 : i64, scratch_operands = 0 : i64, tpu.core_type = #tpu.core_type<tc>, window_params = [{transform_indices = @transform_0, window_bounds = array<i64: 16, 128>}, {pipeline_mode = #tpu.pipeline_mode<synchronous>, transform_indices = @transform_1, window_bounds = array<i64: 128, 848>}, {pipeline_mode = #tpu.pipeline_mode<synchronous>, transform_indices = @transform_2, window_bounds = array<i64: 1, 848>}, {transform_indices = @transform_3, window_bounds = array<i64: 16, 848>}]} {
    %c0 = arith.constant 0 : index
    %c0_0 = arith.constant 0 : index
    %0 = vector.load %arg1[%c0, %c0_0] : memref<16x128xf32, #tpu.memory_space<vmem>>, vector<16x128xf32>
    %c0_1 = arith.constant 0 : index
    %c0_2 = arith.constant 0 : index
    %1 = vector.load %arg2[%c0_1, %c0_2] : memref<128x848xf32, #tpu.memory_space<vmem>>, vector<128x848xf32>
    %cst = arith.constant dense<0.000000e+00> : vector<16x848xf32>
    %2 = tpu.matmul %0, %1, %cst {dimension_numbers = #tpu.dot_dimension_numbers<[1], [0], [0], [1], [0, 0, 1, 1], [], []>} : vector<16x128xf32>, vector<128x848xf32>, vector<16x848xf32> -> vector<16x848xf32>
    %c0_3 = arith.constant 0 : index
    %c0_4 = arith.constant 0 : index
    %3 = vector.load %arg3[%c0_3, %c0_4] : memref<1x848xf32, #tpu.memory_space<vmem>>, vector<1x848xf32>
    %4 = vector.broadcast %3 : vector<1x848xf32> to vector<16x848xf32>
    %5 = arith.addf %2, %4 : vector<16x848xf32>
    %cst_5 = arith.constant 0.000000e+00 : f32
    %6 = vector.broadcast %cst_5 : f32 to vector<16x848xf32>
    %7 = arith.maximumf %5, %6 : vector<16x848xf32>
    %c0_6 = arith.constant 0 : index
    %c0_7 = arith.constant 0 : index
    %8 = vector.load %arg4[%c0_6, %c0_7] : memref<16x848xf32, #tpu.memory_space<vmem>>, vector<16x848xf32>
    tpu.vector_store %arg4[%c0_6, %c0_7], %7 {strides = array<i32>} : memref<16x848xf32, #tpu.memory_space<vmem>>, vector<16x848xf32>,
    return
  }
  func.func @transform_0(%arg0: i32) -> (i32, i32) {
    %c0_i32 = arith.constant 0 : i32
    %c0_i32_0 = arith.constant 0 : i32
    return %arg0, %c0_i32 : i32, i32
  }
  func.func @transform_1(%arg0: i32) -> (i32, i32) {
    %c0_i32 = arith.constant 0 : i32
    %c0_i32_0 = arith.constant 0 : i32
    %c0_i32_1 = arith.constant 0 : i32
    return %c0_i32, %c0_i32_0 : i32, i32
  }
  func.func @transform_2(%arg0: i32) -> (i32, i32) {
    %c0_i32 = arith.constant 0 : i32
    %c0_i32_0 = arith.constant 0 : i32
    %c0_i32_1 = arith.constant 0 : i32
    return %c0_i32, %c0_i32_0 : i32, i32
  }
  func.func @transform_3(%arg0: i32) -> (i32, i32) {
    %c0_i32 = arith.constant 0 : i32
    %c0_i32_0 = arith.constant 0 : i32
    return %arg0, %c0_i32 : i32, i32
  }
}

</mosaic_0001>

<bundles_post_ra>
// kernel: tpu_custom_call.1
= control target key start
LH: loop header
LB: loop body
LE: loop exit
PB: predicated region body
PF: predicated region fallthrough
CT: control target
= control target key end

     0   :  { %v726_v7 = vmov 0.0   ;;  %s1125_s0 = inlined_call_operand.vmem [shape: f32[16,128], index: 0, kind: input, shape index: {}]   ;;  %s1126_s1 = inlined_call_operand.vmem [shape: f32[128,848], index: 1, kind: input, shape index: {}]   ;;  %s1127_s2 = inlined_call_operand.vmem [shape: f32[1,848], index: 2, kind: input, shape index: {}]   ;;  %s1128_s3 = inlined_call_operand.hbm [shape: f32[16,848], index: 3, kind: output, shape index: {}]  }
   0x1   :  { %v18_v0 = vld [vmem:[%s1126_s1 + $0x8] sm:$0xff]  ;;  %v25_v1 = vld [vmem:[%s1126_s1 + $0x40] sm:$0xff]  ;;  %v24_v4 = vld [vmem:[%s1126_s1 + $0x38] sm:$0xff]  ;;  %230 = vmatprep.mubr.f32.mxu0 %v726_v7  ;;  %307 = vmatprep.mubr.f32.mxu1 %v726_v7 }
   0x2   :  { %v17_v2 = vld [vmem:[%s1126_s1] sm:$0xff]  ;;  %v570_v3 = vpack.c.bf16 %v25_v1, %v18_v0  ;;  %v20_v5 = vld [vmem:[%s1126_s1 + $0x18] sm:$0xff]  ;;  %v27_v6 = vld [vmem:[%s1126_s1 + $0x50] sm:$0xff] }
   0x3   :  { %v572_v8 = vpack.c.bf16 %v24_v4, %v17_v2  ;;  %v602_v9 = vpack.c.bf16 %v27_v6, %v20_v5  ;;  %v32_v10 = vld [vmem:[%s1126_s1 + $0x78] sm:$0xff]  ;;  %v39_v11 = vld [vmem:[%s1126_s1 + $0xb0] sm:$0xff]  ;;  %v26_v14 = vld [vmem:[%s1126_s1 + $0x48] sm:$0xff] }
   0x4   :  { %v19_v12 = vld [vmem:[%s1126_s1 + $0x10] sm:$0xff]  ;;  %571 = vmatprep.subr.bf16.mxu0 %v570_v3  ;;  %v574_v13 = vpack.c.bf16 %v39_v11, %v32_v10  ;;  %v38_v16 = vld [vmem:[%s1126_s1 + $0xa8] sm:$0xff]  ;;  %v41_v20 = vld [vmem:[%s1126_s1 + $0xc0] sm:$0xff] }
   0x5   :  { %v31_v15 = vld [vmem:[%s1126_s1 + $0x70] sm:$0xff]  ;;  %573 = vmatpush1.bf16.msra.mxu0 %v572_v8  ;;  %603 = vmatprep.subr.bf16.mxu1 %v602_v9  ;;  %v604_v17 = vpack.c.bf16 %v26_v14, %v19_v12  ;;  %v34_v19 = vld [vmem:[%s1126_s1 + $0x88] sm:$0xff]  ;;  %v53_v23 = vld [vmem:[%s1126_s1 + $0x120] sm:$0xff] }
   0x6   :  { %v576_v18 = vpack.c.bf16 %v38_v16, %v31_v15  ;;  %v46_v21 = vld [vmem:[%s1126_s1 + $0xe8] sm:$0xff]  ;;  %575 = vmatprep.subr.bf16.mxu0 %v574_v13  ;;  %v606_v22 = vpack.c.bf16 %v41_v20, %v34_v19  ;;  %v33_v24 = vld [vmem:[%s1126_s1 + $0x80] sm:$0xff]  ;;  %v40_v25 = vld [vmem:[%s1126_s1 + $0xb8] sm:$0xff] }
   0x7   :  { %605 = vmatpush1.bf16.msra.mxu1 %v604_v17  ;;  %v578_v26 = vpack.c.bf16 %v53_v23, %v46_v21  ;;  %v608_v27 = vpack.c.bf16 %v40_v25, %v33_v24  ;;  %v45_v28 = vld [vmem:[%s1126_s1 + $0xe0] sm:$0xff]  ;;  %v52_v29 = vld [vmem:[%s1126_s1 + $0x118] sm:$0xff]  ;;  %v55_v31 = vld [vmem:[%s1126_s1 + $0x130] sm:$0xff] }
   0x8   :  { %v48_v30 = vld [vmem:[%s1126_s1 + $0xf8] sm:$0xff]  ;;  %607 = vmatprep.subr.bf16.mxu1 %v606_v22  ;;  %v67_v33 = vld [vmem:[%s1126_s1 + $0x190] sm:$0xff]  ;;  %v580_v34 = vpack.c.bf16 %v52_v29, %v45_v28  ;;  %v54_v37 = vld [vmem:[%s1126_s1 + $0x128] sm:$0xff] }
   0x9   :  { %v60_v32 = vld [vmem:[%s1126_s1 + $0x158] sm:$0xff]  ;;  %577 = vmatpush1.bf16.msra.mxu0 %v576_v18  ;;  %v610_v35 = vpack.c.bf16 %v55_v31, %v48_v30  ;;  %v47_v36 = vld [vmem:[%s1126_s1 + $0xf0] sm:$0xff]  ;;  %v66_v40 = vld [vmem:[%s1126_s1 + $0x188] sm:$0xff] }
   0xa   :  { %v59_v38 = vld [vmem:[%s1126_s1 + $0x150] sm:$0xff]  ;;  %579 = vmatprep.subr.bf16.mxu0 %v578_v26  ;;  %v582_v39 = vpack.c.bf16 %v67_v33, %v60_v32  ;;  %v62_v41 = vld [vmem:[%s1126_s1 + $0x168] sm:$0xff]  ;;  %v69_v42 = vld [vmem:[%s1126_s1 + $0x1a0] sm:$0xff]  ;;  %v612_v43 = vpack.c.bf16 %v54_v37, %v47_v36 }
   0xb   :  { %609 = vmatpush1.bf16.msra.mxu1 %v608_v27  ;;  %v74_v44 = vld [vmem:[%s1126_s1 + $0x1c8] sm:$0xff]  ;;  %v81_v45 = vld [vmem:[%s1126_s1 + $0x200] sm:$0xff]  ;;  %v614_v46 = vpack.c.bf16 %v69_v42, %v62_v41  ;;  %v68_v48 = vld [vmem:[%s1126_s1 + $0x198] sm:$0xff]  ;;  %v584_v49 = vpack.c.bf16 %v66_v40, %v59_v38 }
   0xc   :  { %611 = vmatprep.subr.bf16.mxu1 %v610_v35  ;;  %v61_v47 = vld [vmem:[%s1126_s1 + $0x160] sm:$0xff]  ;;  %v76_v50 = vld [vmem:[%s1126_s1 + $0x1d8] sm:$0xff]  ;;  %v83_v51 = vld [vmem:[%s1126_s1 + $0x210] sm:$0xff]  ;;  %v586_v52 = vpack.c.bf16 %v81_v45, %v74_v44 }
   0xd   :  { %581 = vmatpush1.bf16.msra.mxu0 %v580_v34  ;;  %v73_v53 = vld [vmem:[%s1126_s1 + $0x1c0] sm:$0xff]  ;;  %v80_v54 = vld [vmem:[%s1126_s1 + $0x1f8] sm:$0xff]  ;;  %v616_v55 = vpack.c.bf16 %v68_v48, %v61_v47  ;;  %v95_v57 = vld [vmem:[%s1126_s1 + $0x270] sm:$0xff]  ;;  %v618_v58 = vpack.c.bf16 %v83_v51, %v76_v50 }
   0xe   :  { %583 = vmatprep.subr.bf16.mxu0 %v582_v39  ;;  %v88_v56 = vld [vmem:[%s1126_s1 + $0x238] sm:$0xff]  ;;  %v75_v59 = vld [vmem:[%s1126_s1 + $0x1d0] sm:$0xff]  ;;  %v82_v60 = vld [vmem:[%s1126_s1 + $0x208] sm:$0xff]  ;;  %v588_v61 = vpack.c.bf16 %v80_v54, %v73_v53 }
   0xf   :  { %613 = vmatpush1.bf16.msra.mxu1 %v612_v43  ;;  %v90_v62 = vld [vmem:[%s1126_s1 + $0x248] sm:$0xff]  ;;  %v97_v63 = vld [vmem:[%s1126_s1 + $0x280] sm:$0xff]  ;;  %v590_v0 = vpack.c.bf16 %v95_v57, %v88_v56  ;;  %v87_v1 = vld [vmem:[%s1126_s1 + $0x230] sm:$0xff]  ;;  %v620_v3 = vpack.c.bf16 %v82_v60, %v75_v59 }
  0x10   :  { %615 = vmatprep.subr.bf16.mxu1 %v614_v46  ;;  %v94_v2 = vld [vmem:[%s1126_s1 + $0x268] sm:$0xff]  ;;  %v109_v5 = vld [vmem:[%s1126_s1 + $0x2e0] sm:$0xff]  ;;  %v622_v6 = vpack.c.bf16 %v97_v63, %v90_v62  ;;  %v96_v9 = vld [vmem:[%s1126_s1 + $0x278] sm:$0xff] }
  0x11   :  { %585 = vmatpush1.bf16.msra.mxu0 %v584_v49  ;;  %v102_v4 = vld [vmem:[%s1126_s1 + $0x2a8] sm:$0xff]  ;;  %v89_v8 = vld [vmem:[%s1126_s1 + $0x240] sm:$0xff]  ;;  %v592_v10 = vpack.c.bf16 %v94_v2, %v87_v1  ;;  %v104_v11 = vld [vmem:[%s1126_s1 + $0x2b8] sm:$0xff] }
  0x12   :  { %587 = vmatprep.subr.bf16.mxu0 %v586_v52  ;;  %v111_v12 = vld [vmem:[%s1126_s1 + $0x2f0] sm:$0xff]  ;;  %v594_v13 = vpack.c.bf16 %v109_v5, %v102_v4  ;;  %v101_v14 = vld [vmem:[%s1126_s1 + $0x2a0] sm:$0xff]  ;;  %v108_v15 = vld [vmem:[%s1126_s1 + $0x2d8] sm:$0xff]  ;;  %v624_v16 = vpack.c.bf16 %v96_v9, %v89_v8 }
  0x13   :  { %617 = vmatpush1.bf16.msra.mxu1 %v616_v55  ;;  %v116_v17 = vld [vmem:[%s1126_s1 + $0x318] sm:$0xff]  ;;  %v123_v18 = vld [vmem:[%s1126_s1 + $0x350] sm:$0xff]  ;;  %v626_v19 = vpack.c.bf16 %v111_v12, %v104_v11  ;;  %v110_v21 = vld [vmem:[%s1126_s1 + $0x2e8] sm:$0xff]  ;;  %v596_v22 = vpack.c.bf16 %v108_v15, %v101_v14 }
  0x14   :  { %619 = vmatprep.subr.bf16.mxu1 %v618_v58  ;;  %v103_v20 = vld [vmem:[%s1126_s1 + $0x2b0] sm:$0xff]  ;;  %v118_v23 = vld [vmem:[%s1126_s1 + $0x328] sm:$0xff]  ;;  %v125_v24 = vld [vmem:[%s1126_s1 + $0x360] sm:$0xff]  ;;  %v598_v25 = vpack.c.bf16 %v123_v18, %v116_v17 }
  0x15   :  { %589 = vmatpush1.bf16.msra.mxu0 %v588_v61  ;;  %v115_v26 = vld [vmem:[%s1126_s1 + $0x310] sm:$0xff]  ;;  %v122_v27 = vld [vmem:[%s1126_s1 + $0x348] sm:$0xff]  ;;  %v628_v28 = vpack.c.bf16 %v110_v21, %v103_v20  ;;  %v29_v30 = vld [vmem:[%s1126_s1 + $0x60] sm:$0xff]  ;;  %v630_v31 = vpack.c.bf16 %v125_v24, %v118_v23 }
  0x16   :  { %591 = vmatprep.subr.bf16.mxu0 %v590_v0  ;;  %v22_v29 = vld [vmem:[%s1126_s1 + $0x28] sm:$0xff]  ;;  %v117_v32 = vld [vmem:[%s1126_s1 + $0x320] sm:$0xff]  ;;  %v124_v33 = vld [vmem:[%s1126_s1 + $0x358] sm:$0xff]  ;;  %v600_v34 = vpack.c.bf16 %v122_v27, %v115_v26 }
  0x17   :  { %621 = vmatpush1.bf16.msra.mxu1 %v620_v3  ;;  %v23_v35 = vld [vmem:[%s1126_s1 + $0x30] sm:$0xff]  ;;  %v30_v36 = vld [vmem:[%s1126_s1 + $0x68] sm:$0xff]  ;;  %v634_v37 = vpack.c.bf16 %v29_v30, %v22_v29  ;;  %v21_v38 = vld [vmem:[%s1126_s1 + $0x20] sm:$0xff]  ;;  %v632_v40 = vpack.c.bf16 %v124_v33, %v117_v32 }
  0x18   :  { %623 = vmatprep.subr.bf16.mxu1 %v622_v6  ;;  %v28_v39 = vld [vmem:[%s1126_s1 + $0x58] sm:$0xff]  ;;  %v43_v42 = vld [vmem:[%s1126_s1 + $0xd0] sm:$0xff]  ;;  %v666_v43 = vpack.c.bf16 %v30_v36, %v23_v35  ;;  %v971_v44 = vld [vmem:[%s1125_s0] sm:$0xff] }
  0x19   :  { %593 = vmatpush1.bf16.msra.mxu0 %v592_v10  ;;  %v36_v41 = vld [vmem:[%s1126_s1 + $0x98] sm:$0xff]  ;;  %v636_v45 = vpack.c.bf16 %v28_v39, %v21_v38  ;;  %v37_v46 = vld [vmem:[%s1126_s1 + $0xa0] sm:$0xff]  ;;  %v35_v49 = vld [vmem:[%s1126_s1 + $0x90] sm:$0xff] }
  0x1a   :  { %595 = vmatprep.subr.bf16.mxu0 %v594_v13  ;;  %v44_v47 = vld [vmem:[%s1126_s1 + $0xd8] sm:$0xff]  ;;  %v638_v48 = vpack.c.bf16 %v43_v42, %v36_v41  ;;  %v42_v50 = vld [vmem:[%s1126_s1 + $0xc8] sm:$0xff]  ;;  %v57_v52 = vld [vmem:[%s1126_s1 + $0x140] sm:$0xff] }
  0x1b   :  { %625 = vmatpush1.bf16.msra.mxu1 %v624_v16  ;;  %v50_v51 = vld [vmem:[%s1126_s1 + $0x108] sm:$0xff]  ;;  %v670_v53 = vpack.c.bf16 %v44_v47, %v37_v46  ;;  %v640_v54 = vpack.c.bf16 %v42_v50, %v35_v49  ;;  %v51_v55 = vld [vmem:[%s1126_s1 + $0x110] sm:$0xff]  ;;  %v49_v59 = vld [vmem:[%s1126_s1 + $0x100] sm:$0xff] }
  0x1c   :  { %627 = vmatprep.subr.bf16.mxu1 %v626_v19  ;;  %v58_v56 = vld [vmem:[%s1126_s1 + $0x148] sm:$0xff]  ;;  %v642_v58 = vpack.c.bf16 %v57_v52, %v50_v51  ;;  %v56_v60 = vld [vmem:[%s1126_s1 + $0x138] sm:$0xff]  ;;  %v71_v62 = vld [vmem:[%s1126_s1 + $0x1b0] sm:$0xff] }
  0x1d   :  { %597 = vmatpush1.bf16.msra.mxu0 %v596_v22  ;;  %v1002_v57 = vld [vmem:[%s1125_s0 + $0x8] sm:$0xff]  ;;  %v64_v61 = vld [vmem:[%s1126_s1 + $0x178] sm:$0xff] }
  0x1e   :  { %599 = vmatprep.subr.bf16.mxu0 %v598_v25 }
  0x1f   :  { %629 = vmatpush1.bf16.msra.mxu1 %v628_v28 }
  0x20   :  { %631 = vmatprep.subr.bf16.mxu1 %v630_v31 }
  0x21   :  { %601 = vmatpush1.bf16.msra.mxu0 %v600_v34 }
  0x22   :  { %635 = vmatprep.subr.bf16.mxu0 %v634_v37 }
  0x23   :  { %633 = vmatpush1.bf16.msra.mxu1 %v632_v40 }
  0x24   :  { %231 = vmatmul.mubr.f32.vlgmr.msra.gmra.mrb[0].mxu0 %v971_v44  ;;  %667 = vmatprep.subr.bf16.mxu1 %v666_v43 }
  0x25   :  { %637 = vmatpush1.bf16.msra.mxu0 %v636_v45  ;;  %236 = vmatprep.mubr.f32.mxu0 %v726_v7 }
  0x26   :  { %308 = vmatmul.mubr.f32.vlgmr.msra.gmra.mrb[0].mxu1 %v971_v44  ;;  %639 = vmatprep.subr.bf16.mxu0 %v638_v48 }
  0x27   :  { %669 = vmatpush3.bf16.msra.mxu1 %v666_v43  ;;  %313 = vmatprep.mubr.f32.mxu1 %v726_v7 }
  0x28   :  { %8 = vsyncpa [#allocation3], 0  ;;  %671 = vmatprep.subr.bf16.mxu1 %v670_v53  ;;  %v674_v63 = vpack.c.bf16 %v58_v56, %v51_v55  ;;  %237 = vmatmul.mubr.f32.gmra.mrb[2].mxu0 %v1002_v57  ;;  %v644_v0 = vpack.c.bf16 %v56_v60, %v49_v59  ;;  %v65_v1 = vld [vmem:[%s1126_s1 + $0x180] sm:$0xff]  ;;  %v72_v2 = vld [vmem:[%s1126_s1 + $0x1b8] sm:$0xff]  ;;  %v646_v3 = vpack.c.bf16 %v71_v62, %v64_v61  ;;  %v131_v46 = vlaneseq }
  0x29   :  { %641 = vmatpush1.bf16.msra.mxu0 %v640_v54  ;;  %384 = vmatprep.mubr.f32.mxu0 %v726_v7  ;;  %v63_v4 = vld [vmem:[%s1126_s1 + $0x170] sm:$0xff]  ;;  %v70_v5 = vld [vmem:[%s1126_s1 + $0x1a8] sm:$0xff]  ;;  %v85_v8 = vld [vmem:[%s1126_s1 + $0x220] sm:$0xff]  ;;  %v678_v9 = vpack.c.bf16 %v72_v2, %v65_v1  ;;  %vm492_vm0 = vcmask 654336  }
  0x2a   :  { %643 = vmatprep.subr.bf16.mxu0 %v642_v58  ;;  %314 = vmatmul.mubr.f32.gmra.mrb[2].mxu1 %v1002_v57  ;;  %v78_v6 = vld [vmem:[%s1126_s1 + $0x1e8] sm:$0xff]  ;;  %v648_v10 = vpack.c.bf16 %v70_v5, %v63_v4  ;;  %v79_v11 = vld [vmem:[%s1126_s1 + $0x1f0] sm:$0xff]  ;;  %v77_v14 = vld [vmem:[%s1126_s1 + $0x1e0] sm:$0xff]  ;;  %v132_v47 = vshrl.u32 %v131_v46, 7 }
  0x2b   :  { %673 = vmatpush3.bf16.msra.mxu1 %v670_v53  ;;  %567 = vmatprep.mubr.f32.mxu1 %v971_v44  ;;  %v86_v12 = vld [vmem:[%s1126_s1 + $0x228] sm:$0xff]  ;;  %v650_v13 = vpack.c.bf16 %v85_v8, %v78_v6  ;;  %v84_v15 = vld [vmem:[%s1126_s1 + $0x218] sm:$0xff]  ;;  %v99_v17 = vld [vmem:[%s1126_s1 + $0x290] sm:$0xff] }
  0x2c   :  { %675 = vmatprep.subr.bf16.mxu1 %v674_v63  ;;  %v92_v16 = vld [vmem:[%s1126_s1 + $0x258] sm:$0xff]  ;;  %v682_v18 = vpack.c.bf16 %v86_v12, %v79_v11  ;;  %v652_v19 = vpack.c.bf16 %v84_v15, %v77_v14  ;;  %v93_v20 = vld [vmem:[%s1126_s1 + $0x260] sm:$0xff]  ;;  %v91_v23 = vld [vmem:[%s1126_s1 + $0x250] sm:$0xff]  ;;  %v133_v48 = vsub.s32 0, %v132_v47  ;;  %v137_v50 = vsub.s32 1, %v132_v47 }
  0x2d   :  { %645 = vmatpush1.bf16.msra.mxu0 %v644_v0  ;;  %v100_v21 = vld [vmem:[%s1126_s1 + $0x298] sm:$0xff]  ;;  %v654_v22 = vpack.c.bf16 %v99_v17, %v92_v16  ;;  %v98_v24 = vld [vmem:[%s1126_s1 + $0x288] sm:$0xff]  ;;  %v113_v26 = vld [vmem:[%s1126_s1 + $0x300] sm:$0xff]  ;;  %v141_v51 = vsub.s32 2, %v132_v47  ;;  %v145_v52 = vsub.s32 3, %v132_v47  ;;  %v149_v16 = vsub.s32 4, %v132_v47 }
  0x2e   :  { %647 = vmatprep.subr.bf16.mxu0 %v646_v3  ;;  %v106_v25 = vld [vmem:[%s1126_s1 + $0x2c8] sm:$0xff]  ;;  %v686_v27 = vpack.c.bf16 %v100_v21, %v93_v20  ;;  %v656_v28 = vpack.c.bf16 %v98_v24, %v91_v23  ;;  %v107_v29 = vld [vmem:[%s1126_s1 + $0x2d0] sm:$0xff]  ;;  %v105_v32 = vld [vmem:[%s1126_s1 + $0x2c0] sm:$0xff]  ;;  %v153_v17 = vsub.s32 5, %v132_v47 }
  0x2f   :  { %677 = vmatpush3.bf16.msra.mxu1 %v674_v63  ;;  %v114_v30 = vld [vmem:[%s1126_s1 + $0x308] sm:$0xff]  ;;  %v658_v31 = vpack.c.bf16 %v113_v26, %v106_v25  ;;  %v112_v33 = vld [vmem:[%s1126_s1 + $0x2f8] sm:$0xff]  ;;  %v127_v35 = vld [vmem:[%s1126_s1 + $0x370] sm:$0xff] }
  0x30   :  { %679 = vmatprep.subr.bf16.mxu1 %v678_v9  ;;  %v120_v34 = vld [vmem:[%s1126_s1 + $0x338] sm:$0xff]  ;;  %v690_v36 = vpack.c.bf16 %v114_v30, %v107_v29  ;;  %v660_v37 = vpack.c.bf16 %v112_v33, %v105_v32  ;;  %v121_v38 = vld [vmem:[%s1126_s1 + $0x340] sm:$0xff]  ;;  %v119_v41 = vld [vmem:[%s1126_s1 + $0x330] sm:$0xff] }
  0x31   :  { %649 = vmatpush1.bf16.msra.mxu0 %v648_v10  ;;  %v128_v39 = vld [vmem:[%s1126_s1 + $0x378] sm:$0xff]  ;;  %v662_v40 = vpack.c.bf16 %v127_v35, %v120_v34  ;;  %v126_v42 = vld [vmem:[%s1126_s1 + $0x368] sm:$0xff]  ;;  %v129_v49 = vld [vmem:[%s1127_s2] sm:$0x7f]  ;;  %s727_s2 = smov [#allocation2]  }
  0x32   :  { %651 = vmatprep.subr.bf16.mxu0 %v650_v13  ;;  %v694_v43 = vpack.c.bf16 %v128_v39, %v121_v38  ;;  %v664_v45 = vpack.c.bf16 %v126_v42, %v119_v41  ;;  %v134_v53 = vrot.slane %v129_v49, %v133_v48  ;;  %v138_v54 = vrot.slane %v129_v49, %v137_v50  ;;  %s506_s22 = sshll.u32 %s727_s2, 4  ;;  %s507_s22 = int_to_ptr.vmem [resolvable:$true] %s506_s22 }
  0x33   :  { %681 = vmatpush3.bf16.msra.mxu1 %v678_v9  ;;  %v142_v55 = vrot.slane %v129_v49, %v141_v51  ;;  %v146_v56 = vrot.slane %v129_v49, %v145_v52  ;;  %v154_v20 = vrot.slane %v129_v49, %v153_v17  ;;  %s702_s23 = scalar_lea.vmem %s507_s22, 1792  ;;  %p707_p1 = scmp.lt.s32.totalorder %s507_s22, %s507_s22 }
  0x34   :  { %683 = vmatprep.subr.bf16.mxu1 %v682_v18  ;;  %p703_p0 = scmp.ne.s32.totalorder %s507_s22, %s702_s23  ;;  %p708_p2 = scmp.lt.s32.totalorder %s702_s23, %s702_s23 }
  0x35   :  { %653 = vmatpush1.bf16.msra.mxu0 %v652_v19  ;;  %v150_v19 = vrot.slane %v129_v49, %v149_v16 }
  0x36   :  { %655 = vmatprep.subr.bf16.mxu0 %v654_v22  ;;  %p709_p3 = por %p708_p2, %p707_p1 }
  0x37   :  { %685 = vmatpush3.bf16.msra.mxu1 %v682_v18  ;;  %v157_v18 = vsub.s32 6, %v132_v47 }
  0x38   :  { %687 = vmatprep.subr.bf16.mxu1 %v686_v27  ;;  %p710_p4 = pnand %p709_p3, %p703_p0 }
  0x39   :  { %657 = vmatpush1.bf16.msra.mxu0 %v656_v28  ;;  %v158_v21 = vrot.slane %v129_v49, %v157_v18 }
  0x3a   :  { %659 = vmatprep.subr.bf16.mxu0 %v658_v31 }
  0x3b   :  { %689 = vmatpush3.bf16.msra.mxu1 %v686_v27 }
  0x3c   :  { %691 = vmatprep.subr.bf16.mxu1 %v690_v36 }
  0x3d   :  { %661 = vmatpush1.bf16.msra.mxu0 %v660_v37 }
  0x3e   :  { %663 = vmatprep.subr.bf16.mxu0 %v662_v40 }
  0x3f   :  { %693 = vmatpush3.bf16.msra.mxu1 %v690_v36 }
  0x40   :  { %695 = vmatprep.subr.bf16.mxu1 %v694_v43 }
  0x41   :  { %665 = vmatpush1.bf16.msra.mxu0 %v664_v45 }
  0x43   :  { %697 = vmatpush3.bf16.msra.mxu1 %v694_v43 }
  0x44   :  { %385 = vmatmul.mubr.f32.vlgmr.msra.gmra.mrb[4].mxu0 %v971_v44 }
  0x45   :  { %390 = vmatprep.mubr.f32.mxu0 %v726_v7 }
  0x46   :  { %568 = vmatmul.mubr.f32.vlgmr.msra.gmra.mrb[4].mxu1 %v1002_v57 }
  0x48   :  { %391 = vmatmul.mubr.f32.gmra.mrb[6].mxu0 %v1002_v57 }
  0xf7   :  { %v232_v44 = vpop.f32.mrb[0].mxu0 }
  0xf8   :  { %v233_v7 = vadd.f32 %v232_v44, %v134_v53  ;;  %v234_v58 = vpop.f32.mrb[1].mxu0 }
  0xf9   :  { %v235_v59 = vadd.f32 %v234_v58, %v138_v54  ;;  %v309_v60 = vpop.f32.mrb[0].mxu1 }
  0xfa   :  { %v472_v57 = vmax.f32 %v233_v7, 0.0  ;;  %v310_v61 = vadd.f32 %v309_v60, %v142_v55  ;;  %v311_v62 = vpop.f32.mrb[1].mxu1 }
  0xfb   :  { %v473_v63 = vmax.f32 %v235_v59, 0.0  ;;  %v312_v0 = vadd.f32 %v311_v62, %v146_v56  ;;  %v238_v1 = vpop.f32.mrb[2].mxu0 }
  0xfc   :  { %486 = vst [vmem:[#allocation2] sm:$0xff] %v472_v57  ;;  %v474_v2 = vmax.f32 %v310_v61, 0.0  ;;  %v239_v3 = vadd.f32 %v238_v1, %v134_v53  ;;  %v240_v4 = vpop.f32.mrb[3].mxu0 }
  0xfd   :  { %487 = vst [vmem:[#allocation2 + $0x8] sm:$0xff] %v473_v63  ;;  %v475_v5 = vmax.f32 %v312_v0, 0.0  ;;  %v241_v6 = vadd.f32 %v240_v4, %v138_v54  ;;  %v315_v8 = vpop.f32.mrb[2].mxu1 }
  0xfe   :  { %488 = vst [vmem:[#allocation2 + $0x10] sm:$0xff] %v474_v2  ;;  %v479_v9 = vmax.f32 %v239_v3, 0.0  ;;  %v316_v10 = vadd.f32 %v315_v8, %v142_v55  ;;  %v317_v11 = vpop.f32.mrb[3].mxu1 }
  0xff   :  { %489 = vst [vmem:[#allocation2 + $0x18] sm:$0xff] %v475_v5  ;;  %v480_v12 = vmax.f32 %v241_v6, 0.0  ;;  %v318_v13 = vadd.f32 %v317_v11, %v146_v56 }
 0x100   :  { %494 = vst [vmem:[#allocation2 + $0x38] sm:$0xff] %v479_v9  ;;  %v481_v14 = vmax.f32 %v316_v10, 0.0 }
 0x101   :  { %495 = vst [vmem:[#allocation2 + $0x40] sm:$0xff] %v480_v12  ;;  %v482_v15 = vmax.f32 %v318_v13, 0.0 }
 0x102   :  { %496 = vst [vmem:[#allocation2 + $0x48] sm:$0xff] %v481_v14 }
 0x103   :  { %497 = vst [vmem:[#allocation2 + $0x50] sm:$0xff] %v482_v15 }
 0x117   :  { %v386_v22 = vpop.f32.mrb[4].mxu0 }
 0x118   :  { %v387_v23 = vadd.f32 %v386_v22, %v150_v19  ;;  %v388_v24 = vpop.f32.mrb[5].mxu0 }
 0x119   :  { %v389_v25 = vadd.f32 %v388_v24, %v154_v20  ;;  %v569_v26 = vpop.f32.mrb[4].mxu1 }
 0x11a   :  { %v476_v27 = vmax.f32 %v387_v23, 0.0  ;;  %v469_v28 = vadd.f32 %v569_v26, %v158_v21  ;;  %v463_v29 = vpop.f32.mrb[5].mxu1 }
 0x11b   :  { %v477_v30 = vmax.f32 %v389_v25, 0.0  ;;  %v392_v31 = vpop.f32.mrb[6].mxu0  ;;  %v464_v32 = vadd.f32 %v463_v29, %v158_v21 }
 0x11c   :  { %490 = vst [vmem:[#allocation2 + $0x20] sm:$0xff] %v476_v27  ;;  %v485_v33 = vmax.f32 %v469_v28, 0.0  ;;  %v393_v34 = vadd.f32 %v392_v31, %v150_v19  ;;  %v394_v35 = vpop.f32.mrb[7].mxu0 }
 0x11d   :  { %491 = vst [vmem:[#allocation2 + $0x28] sm:$0xff] %v477_v30  ;;  %v478_v36 = vmax.f32 %v464_v32, 0.0  ;;  %v395_v37 = vadd.f32 %v394_v35, %v154_v20 }
 0x11e   :  { %500 = vst.msk [vmem:[#allocation2 + $0x68] sm:$0xff] %vm492_vm0, %v485_v33  ;;  %v483_v38 = vmax.f32 %v393_v34, 0.0 }
 0x11f   :  { %493 = vst.msk [vmem:[#allocation2 + $0x30] sm:$0xff] %vm492_vm0, %v478_v36  ;;  %v484_v39 = vmax.f32 %v395_v37, 0.0 }
 0x120   :  { %498 = vst [vmem:[#allocation2 + $0x58] sm:$0xff] %v483_v38 }
 0x121   :  { %499 = vst [vmem:[#allocation2 + $0x60] sm:$0xff] %v484_v39 }
 0x122   :  { %713 = shalt.err (!%p710_p4)
}
 0x123   :  { %s714_s26 = scalar_lea.hbm %s1128_s3, 1792 }
 0x124   :  { %p715_p5 = scmp.ne.s32.totalorder %s1128_s3, %s714_s26  ;;  %p718_p6 = scmp.lt.u32.totalorder %s714_s26, %s1128_s3 }
 0x126   :  { %p720_p7 = pnand %p718_p6, %p715_p5 }
 0x128   :  { %723 = shalt.err (!%p720_p7)
}
 0x129   :  { %s728_s4 = smov 896   ;;  %s729_s5 = smov 56  }
 0x12a   :  { %512 = dma.vmem_to_hbm [thread:$0]  %s507_s22, 1792, %s1128_s3, [#allocation3], %s728_s4, %s728_s4, %s729_s5  }
 0x12b   :  { %724 = dma.done.wait [#allocation3], 1792  }
 0x12c   :  { %725 = vsyncadd [#allocation3], 4294965504 }
 0x12d   :  { %516 = vsyncpa [#allocation3], 1 }

</bundles_post_ra>
